<compile_context>
chip_gen: v5e
topology: v5e:2x2
jax: 0.10.0
libtpu: 0.0.40
codegen_flags: <defaults>
</compile_context>

<pallas_src>
import functools

import jax
import jax.numpy as jnp
from jax import lax
from jax.experimental import pallas as pl
from jax.experimental.pallas import tpu as pltpu


# Contract the last dim of both operands: (HC, E) x (TB, E) -> (HC, TB); no transpose.
_NT_DIMS = (((1,), (1,)), ((), ()))


def hybrid_cf_kernel(u_ref, i_ref, w1u_ref, w1i_ref, b1_ref, w2_ref, b2_ref,
                     out_ref, *, n_hc, hc):
    u = u_ref[...]       # (TB, E) bf16
    it = i_ref[...]      # (TB, E) bf16
    acc = None
    for c in range(n_hc):                      # static unroll over hidden-dim chunks
        lo, hi = c * hc, (c + 1) * hc
        # fc1 with the concat folded into two MXU matmuls, f32 accumulation.
        h = lax.dot_general(w1u_ref[lo:hi, :], u, _NT_DIMS,
                            preferred_element_type=jnp.float32)        # (HC, TB)
        h = h + lax.dot_general(w1i_ref[lo:hi, :], it, _NT_DIMS,
                                preferred_element_type=jnp.float32)
        h = h + b1_ref[lo:hi, :]               # (HC, 1) broadcasts along lanes
        h = jnp.maximum(h, 0.0)                # ReLU on VPU
        # fc2 chunk: width-1 output -> VPU multiply + sublane (XLU) reduction.
        part = jnp.sum(h * w2_ref[lo:hi, :], axis=0, keepdims=True)    # (1, TB)
        acc = part if acc is None else acc + part
    out_ref[...] = acc + b2_ref[0, 0]          # lane-dense (1, TB) store


def _round_up(x, m):
    return -(-x // m) * m


def hybrid_cf_forward(u, i, params):
    """u, i: int32 index vectors of shape (B,). Returns f32 (B,)."""
    user_emb, item_emb = params["user_emb"], params["item_emb"]
    w1, b1, w2, b2 = params["w1"], params["b1"], params["w2"], params["b2"]
    E = user_emb.shape[1]
    H = w1.shape[1]
    B = u.shape[0]

    # ---- batch tile: ~1-2 MiB of streamed bf16 per input tile, explicit multiple of
    #      128, and >= 2 grid steps whenever B allows (v7x has 2 TensorCores).
    tb_target = max(1024, min(8192, (2 * 1024 * 1024) // (2 * E)))
    n_blocks = pl.cdiv(B, 128)                    # 128-lane blocks covering B
    tb_blocks = max(1, min(tb_target // 128, n_blocks))
    if n_blocks >= 2:
        tb_blocks = min(tb_blocks, (n_blocks + 1) // 2)
    TB = tb_blocks * 128
    n_grid = pl.cdiv(B, TB)
    B_pad = n_grid * TB

    # ---- hidden-dim chunking (bounds the (HC, TB) f32 intermediate on v7x).
    if H <= 128:
        H_pad = _round_up(H, 8)
        HC = H_pad
    else:
        H_pad = _round_up(H, 128)
        HC = 128
    n_hc = H_pad // HC

    # ---- pad the cheap int32 index vectors (NOT the big embedding matrices).
    if B_pad != B:
        u = jnp.pad(u, (0, B_pad - B))
        i = jnp.pad(i, (0, B_pad - B))

    # Embedding gather straight to batch-major (B_pad, E) bf16; no transpose pass.
    u_e = jnp.take(user_emb, u, axis=0).astype(jnp.bfloat16)
    i_e = jnp.take(item_emb, i, axis=0).astype(jnp.bfloat16)

    def pad_rows(a, rows):
        return a if a.shape[0] == rows else jnp.pad(a, ((0, rows - a.shape[0]), (0, 0)))

    # torch.cat([u_e, i_e], 1) @ w1 folded onto split, transposed W1 (zero-padded rows
    # along H contribute exactly 0 after ReLU * w2_pad=0).
    w1_uT = pad_rows(w1[:E, :].T, H_pad).astype(jnp.bfloat16)       # (H_pad, E)
    w1_iT = pad_rows(w1[E:, :].T, H_pad).astype(jnp.bfloat16)       # (H_pad, E)
    b1_c = pad_rows(b1.reshape(H, 1), H_pad).astype(jnp.float32)    # (H_pad, 1)
    w2_c = pad_rows(w2.reshape(H, 1), H_pad).astype(jnp.float32)    # (H_pad, 1)
    b2_c = b2.reshape(1, 1).astype(jnp.float32)                     # scalar -> SMEM

    kernel = functools.partial(hybrid_cf_kernel, n_hc=n_hc, hc=HC)

    out = pl.pallas_call(
        kernel,
        out_shape=jax.ShapeDtypeStruct((1, B_pad), jnp.float32),
        grid=(n_grid,),
        in_specs=[
            pl.BlockSpec((TB, E), lambda j: (j, 0)),             # u_e tile (streamed)
            pl.BlockSpec((TB, E), lambda j: (j, 0)),             # i_e tile (streamed)
            pl.BlockSpec((H_pad, E), lambda j: (0, 0)),          # W1_u^T (resident)
            pl.BlockSpec((H_pad, E), lambda j: (0, 0)),          # W1_i^T (resident)
            pl.BlockSpec((H_pad, 1), lambda j: (0, 0)),          # b1 (resident)
            pl.BlockSpec((H_pad, 1), lambda j: (0, 0)),          # w2 (resident)
            pl.BlockSpec(memory_space=pltpu.MemorySpace.SMEM),   # b2 scalar
        ],
        out_specs=pl.BlockSpec((1, TB), lambda j: (0, j)),
        compiler_params=pltpu.CompilerParams(
            dimension_semantics=("parallel",),
            vmem_limit_bytes=48 * 1024 * 1024,   # > v5e's 16 MiB default, < v7x's 64 MiB
        ),
    )(u_e, i_e, w1_uT, w1_iT, b1_c, w2_c, b2_c)
    return out[0, :B]                            # squeeze(1) + strip padding


def init_params(key, num_users, num_items, embed_dim, hidden_dim):
    k1, k2, k3, k4, k5, k6 = jax.random.split(key, 6)

    def xavier_uniform(k, shape):
        fan_in, fan_out = shape[0], shape[1]
        bound = (6.0 / (fan_in + fan_out)) ** 0.5
        return jax.random.uniform(k, shape, jnp.float32, -bound, bound)

    def linear_init(kw, kb, in_f, out_f):
        # PyTorch default Linear init: U(-1/sqrt(in_f), 1/sqrt(in_f))
        bound = 1.0 / (in_f ** 0.5)
        w = jax.random.uniform(kw, (in_f, out_f), jnp.float32, -bound, bound)
        b = jax.random.uniform(kb, (out_f,), jnp.float32, -bound, bound)
        return w, b

    user_emb = xavier_uniform(k1, (num_users, embed_dim))
    item_emb = xavier_uniform(k2, (num_items, embed_dim))
    w1, b1 = linear_init(k3, k4, embed_dim * 2, hidden_dim)
    w2, b2 = linear_init(k5, k6, hidden_dim, 1)
    return {"user_emb": user_emb, "item_emb": item_emb,
            "w1": w1, "b1": b1, "w2": w2, "b2": b2}


if __name__ == "__main__":
    num_users, num_items = 10, 20
    embed_dim, hidden_dim = 16, 32
    batch = 8

    key = jax.random.PRNGKey(0)
    kp, ku, ki = jax.random.split(key, 3)
    params = init_params(kp, num_users, num_items, embed_dim, hidden_dim)

    u = jax.random.randint(ku, (batch,), 0, num_users, dtype=jnp.int32)
    i = jax.random.randint(ki, (batch,), 0, num_items, dtype=jnp.int32)

    out = hybrid_cf_forward(u, i, params)
    jax.block_until_ready(out)

    # Cross-check against a pure-JAX reference with matching bf16 MXU inputs / f32 acc.
    # (True parity with the all-f32 PyTorch module is looser due to the bf16 downcast.)
    u_e = jnp.take(params["user_emb"], u, axis=0).astype(jnp.bfloat16)
    i_e = jnp.take(params["item_emb"], i, axis=0).astype(jnp.bfloat16)
    x = jnp.concatenate([u_e, i_e], axis=1)
    w1_bf = params["w1"].astype(jnp.bfloat16)
    h = jnp.maximum(jnp.dot(x, w1_bf, preferred_element_type=jnp.float32)
                    + params["b1"], 0.0)
    ref = (h @ params["w2"] + params["b2"])[:, 0]

    assert out.shape == (batch,)
    assert jnp.allclose(out, ref, atol=2e-3, rtol=2e-3), (out, ref)

    print("KERNEL_OK")
</pallas_src>

<mosaic_0001>
module attributes {stable_mosaic.version = 11 : i64} {
  func.func @hybrid_cf_kernel(%arg0: i32, %arg1: memref<128x16xbf16, #tpu.memory_space<vmem>>, %arg2: memref<128x16xbf16, #tpu.memory_space<vmem>>, %arg3: memref<32x16xbf16, #tpu.memory_space<vmem>>, %arg4: memref<32x16xbf16, #tpu.memory_space<vmem>>, %arg5: memref<32x1xf32, #tpu.memory_space<vmem>>, %arg6: memref<32x1xf32, #tpu.memory_space<vmem>>, %arg7: memref<1x1xf32, #tpu.memory_space<smem>>, %arg8: memref<1x128xf32, #tpu.memory_space<vmem>>) attributes {dimension_semantics = [#tpu.dimension_semantics<parallel>], iteration_bounds = array<i64: 1>, scalar_prefetch = 0 : i64, scratch_operands = 0 : i64, tpu.core_type = #tpu.core_type<tc>, window_params = [{transform_indices = @transform_0, window_bounds = array<i64: 128, 16>}, {transform_indices = @transform_1, window_bounds = array<i64: 128, 16>}, {pipeline_mode = #tpu.pipeline_mode<synchronous>, transform_indices = @transform_2, window_bounds = array<i64: 32, 16>}, {pipeline_mode = #tpu.pipeline_mode<synchronous>, transform_indices = @transform_3, window_bounds = array<i64: 32, 16>}, {pipeline_mode = #tpu.pipeline_mode<synchronous>, transform_indices = @transform_4, window_bounds = array<i64: 32, 1>}, {pipeline_mode = #tpu.pipeline_mode<synchronous>, transform_indices = @transform_5, window_bounds = array<i64: 32, 1>}, {transform_indices = @transform_6, window_bounds = array<i64: 1, 1>}, {transform_indices = @transform_7, window_bounds = array<i64: 1, 128>}]} {
    %c0 = arith.constant 0 : index
    %c0_0 = arith.constant 0 : index
    %0 = vector.load %arg1[%c0, %c0_0] : memref<128x16xbf16, #tpu.memory_space<vmem>>, vector<128x16xbf16>
    %c0_1 = arith.constant 0 : index
    %c0_2 = arith.constant 0 : index
    %1 = vector.load %arg2[%c0_1, %c0_2] : memref<128x16xbf16, #tpu.memory_space<vmem>>, vector<128x16xbf16>
    %c0_3 = arith.constant 0 : index
    %c0_4 = arith.constant 0 : index
    %2 = vector.load %arg3[%c0_3, %c0_4] : memref<32x16xbf16, #tpu.memory_space<vmem>>, vector<32x16xbf16>
    %cst = arith.constant dense<0.000000e+00> : vector<32x128xf32>
    %3 = tpu.matmul %2, %0, %cst {dimension_numbers = #tpu.dot_dimension_numbers<[1], [1], [0], [0], [0, 0, 1, 0], [], []>} : vector<32x16xbf16>, vector<128x16xbf16>, vector<32x128xf32> -> vector<32x128xf32>
    %c0_5 = arith.constant 0 : index
    %c0_6 = arith.constant 0 : index
    %4 = vector.load %arg4[%c0_5, %c0_6] : memref<32x16xbf16, #tpu.memory_space<vmem>>, vector<32x16xbf16>
    %cst_7 = arith.constant dense<0.000000e+00> : vector<32x128xf32>
    %5 = tpu.matmul %4, %1, %cst_7 {dimension_numbers = #tpu.dot_dimension_numbers<[1], [1], [0], [0], [0, 0, 1, 0], [], []>} : vector<32x16xbf16>, vector<128x16xbf16>, vector<32x128xf32> -> vector<32x128xf32>
    %6 = arith.addf %3, %5 : vector<32x128xf32>
    %c0_8 = arith.constant 0 : index
    %c0_9 = arith.constant 0 : index
    %7 = vector.load %arg5[%c0_8, %c0_9] : memref<32x1xf32, #tpu.memory_space<vmem>>, vector<32x1xf32>
    %8 = vector.broadcast %7 : vector<32x1xf32> to vector<32x128xf32>
    %9 = arith.addf %6, %8 : vector<32x128xf32>
    %cst_10 = arith.constant 0.000000e+00 : f32
    %10 = vector.broadcast %cst_10 : f32 to vector<32x128xf32>
    %11 = arith.maximumf %9, %10 : vector<32x128xf32>
    %c0_11 = arith.constant 0 : index
    %c0_12 = arith.constant 0 : index
    %12 = vector.load %arg6[%c0_11, %c0_12] : memref<32x1xf32, #tpu.memory_space<vmem>>, vector<32x1xf32>
    %13 = vector.broadcast %12 : vector<32x1xf32> to vector<32x128xf32>
    %14 = arith.mulf %11, %13 : vector<32x128xf32>
    %cst_13 = arith.constant dense<0.000000e+00> : vector<128xf32>
    %15 = vector.multi_reduction <add>, %14, %cst_13 [0] : vector<32x128xf32> to vector<128xf32>
    %16 = vector.shape_cast %15 : vector<128xf32> to vector<1x128xf32>
    %c0_14 = arith.constant 0 : index
    %c0_15 = arith.constant 0 : index
    %17 = memref.load %arg7[%c0_14, %c0_15] : memref<1x1xf32, #tpu.memory_space<smem>>
    %18 = vector.broadcast %17 : f32 to vector<1x128xf32>
    %19 = arith.addf %16, %18 : vector<1x128xf32>
    %c0_16 = arith.constant 0 : index
    %c0_17 = arith.constant 0 : index
    %20 = vector.load %arg8[%c0_16, %c0_17] : memref<1x128xf32, #tpu.memory_space<vmem>>, vector<1x128xf32>
    tpu.vector_store %arg8[%c0_16, %c0_17], %19 {strides = array<i32>} : memref<1x128xf32, #tpu.memory_space<vmem>>, vector<1x128xf32>,
    return
  }
  func.func @transform_0(%arg0: i32) -> (i32, i32) {
    %c0_i32 = arith.constant 0 : i32
    %c0_i32_0 = arith.constant 0 : i32
    return %arg0, %c0_i32 : i32, i32
  }
  func.func @transform_1(%arg0: i32) -> (i32, i32) {
    %c0_i32 = arith.constant 0 : i32
    %c0_i32_0 = arith.constant 0 : i32
    return %arg0, %c0_i32 : i32, i32
  }
  func.func @transform_2(%arg0: i32) -> (i32, i32) {
    %c0_i32 = arith.constant 0 : i32
    %c0_i32_0 = arith.constant 0 : i32
    %c0_i32_1 = arith.constant 0 : i32
    return %c0_i32, %c0_i32_0 : i32, i32
  }
  func.func @transform_3(%arg0: i32) -> (i32, i32) {
    %c0_i32 = arith.constant 0 : i32
    %c0_i32_0 = arith.constant 0 : i32
    %c0_i32_1 = arith.constant 0 : i32
    return %c0_i32, %c0_i32_0 : i32, i32
  }
  func.func @transform_4(%arg0: i32) -> (i32, i32) {
    %c0_i32 = arith.constant 0 : i32
    %c0_i32_0 = arith.constant 0 : i32
    %c0_i32_1 = arith.constant 0 : i32
    return %c0_i32, %c0_i32_0 : i32, i32
  }
  func.func @transform_5(%arg0: i32) -> (i32, i32) {
    %c0_i32 = arith.constant 0 : i32
    %c0_i32_0 = arith.constant 0 : i32
    %c0_i32_1 = arith.constant 0 : i32
    return %c0_i32, %c0_i32_0 : i32, i32
  }
  func.func @transform_6(%arg0: i32) -> (i32, i32) {
    %c0_i32 = arith.constant 0 : i32
    %c0_i32_0 = arith.constant 0 : i32
    %c0_i32_1 = arith.constant 0 : i32
    return %c0_i32, %c0_i32_0 : i32, i32
  }
  func.func @transform_7(%arg0: i32) -> (i32, i32) {
    %c0_i32 = arith.constant 0 : i32
    %c0_i32_0 = arith.constant 0 : i32
    return %c0_i32, %arg0 : i32, i32
  }
}

</mosaic_0001>

<bundles_post_ra>
// kernel: tpu_custom_call.1
= control target key start
LH: loop header
LB: loop body
LE: loop exit
PB: predicated region body
PF: predicated region fallthrough
CT: control target
= control target key end

     0   :  { %vm118_vm0 = vcmask 130048   ;;  %s659_s0 = inlined_call_operand.vmem [shape: bf16[128,16], index: 0, kind: input, shape index: {}]   ;;  %s660_s1 = inlined_call_operand.vmem [shape: bf16[128,16], index: 1, kind: input, shape index: {}]   ;;  %s661_s2 = inlined_call_operand.vmem [shape: bf16[32,16], index: 2, kind: input, shape index: {}]   ;;  %s662_s3 = inlined_call_operand.vmem [shape: bf16[32,16], index: 3, kind: input, shape index: {}]   ;;  %s663_s4 = inlined_call_operand.vmem [shape: f32[32,1], index: 4, kind: input, shape index: {}]   ;;  %s664_s5 = inlined_call_operand.vmem [shape: f32[32,1], index: 5, kind: input, shape index: {}]   ;;  %s665_s6 = inlined_call_operand.<no memory space> [shape: f32[1,1], index: 6, kind: input, shape index: {}]   ;;  %s666_s7 = inlined_call_operand.hbm [shape: f32[1,128], index: 7, kind: output, shape index: {}]  }
   0x1   :  { %v455_v0 = vld [vmem:[%s660_s1 + $0x38] sm:$0xff] }
   0x2   :  { %v447_v1 = vld [vmem:[%s659_s0 + $0x38] sm:$0xff]  ;;  %v147_v2 = vsel %vm118_vm0, %v455_v0, 0 }
   0x3   :  { %v246_v3 = vsel %vm118_vm0, %v447_v1, 0  ;;  %149 = vmatpush.bf16.xpose.msra.mxu0 %v147_v2  ;;  %460 = vmatpush.bf16.xpose.msra.mxu2 %v147_v2 }
   0x4   :  { %13 = vsyncpa [#allocation4], 0  ;;  %248 = vmatpush.bf16.xpose.msra.mxu1 %v246_v3  ;;  %468 = vmatpush.bf16.xpose.msra.mxu3 %v246_v3  ;;  %v454_v4 = vld [vmem:[%s660_s1 + $0x30] sm:$0xff]  ;;  %v453_v8 = vld [vmem:[%s660_s1 + $0x28] sm:$0xff]  ;;  %v507_v20 = vmov 0   ;;  %s508_s30 = smov [#allocation3]  }
   0x5   :  { %v446_v5 = vld [vmem:[%s659_s0 + $0x30] sm:$0xff]  ;;  %v144_v6 = vsel %vm118_vm0, %v454_v4, 0  ;;  %v445_v9 = vld [vmem:[%s659_s0 + $0x28] sm:$0xff]  ;;  %v141_v10 = vsel %vm118_vm0, %v453_v8, 0  ;;  %v452_v12 = vld [vmem:[%s660_s1 + $0x20] sm:$0xff]  ;;  %478 = vset.pattern.permute.xlu0 %v507_v20  ;;  %479 = vset.pattern.permute.xlu1 %v507_v20  ;;  %s345_s8 = sshll.u32 %s508_s30, 4  ;;  %s346_s8 = int_to_ptr.vmem [resolvable:$true] %s345_s8 }
   0x6   :  { %v243_v7 = vsel %vm118_vm0, %v446_v5, 0  ;;  %v240_v11 = vsel %vm118_vm0, %v445_v9, 0  ;;  %v444_v13 = vld [vmem:[%s659_s0 + $0x20] sm:$0xff]  ;;  %v138_v14 = vsel %vm118_vm0, %v452_v12, 0  ;;  %v451_v16 = vld [vmem:[%s660_s1 + $0x18] sm:$0xff]  ;;  %v269_v18 = vld [vmem:[%s663_s4 + $0x10] sm:$0xff]  ;;  %480 = vset.pattern.permute.xlu2 %v507_v20 }
   0x7   :  { %v237_v15 = vsel %vm118_vm0, %v444_v13, 0  ;;  %v267_v17 = vld [vmem:[%s663_s4] sm:$0xff]  ;;  %v443_v19 = vld [vmem:[%s659_s0 + $0x18] sm:$0xff]  ;;  %283 = vperm.xlu1 %479, %v269_v18   ;;  %v135_v21 = vsel %vm118_vm0, %v451_v16, 0  ;;  %v268_v23 = vld [vmem:[%s663_s4 + $0x8] sm:$0xff]  ;;  %s347_s11 = sshll.u32 %s666_s7, 4  ;;  %s348_s11 = int_to_ptr.hbm [resolvable:$true] %s347_s11 }
   0x8   :  { %273 = vperm.xlu0 %478, %v267_v17   ;;  %v234_v22 = vsel %vm118_vm0, %v443_v19, 0  ;;  %v270_v24 = vld [vmem:[%s663_s4 + $0x18] sm:$0xff]  ;;  %v450_v25 = vld [vmem:[%s660_s1 + $0x10] sm:$0xff]  ;;  %v299_v26 = vld [vmem:[%s664_s5] sm:$0xff] }
   0x9   :  { %v442_v27 = vld [vmem:[%s659_s0 + $0x10] sm:$0xff]  ;;  %305 = vperm.xlu2 %480, %v299_v26   ;;  %v132_v28 = vsel %vm118_vm0, %v450_v25, 0  ;;  %v300_v30 = vld [vmem:[%s664_s5 + $0x8] sm:$0xff]  ;;  %v302_v32 = vld [vmem:[%s664_s5 + $0x18] sm:$0xff] }
   0xa   :  { %v231_v29 = vsel %vm118_vm0, %v442_v27, 0  ;;  %v301_v31 = vld [vmem:[%s664_s5 + $0x10] sm:$0xff]  ;;  %v449_v33 = vld [vmem:[%s660_s1 + $0x8] sm:$0xff]  ;;  %v448_v37 = vld [vmem:[%s660_s1] sm:$0xff] }
   0xb   :  { %150 = vmatpush.bf16.xpose.msra.mxu0 %v144_v6  ;;  %461 = vmatpush.bf16.xpose.msra.mxu2 %v144_v6  ;;  %v441_v34 = vld [vmem:[%s659_s0 + $0x8] sm:$0xff]  ;;  %v129_v35 = vsel %vm118_vm0, %v449_v33, 0  ;;  %v440_v38 = vld [vmem:[%s659_s0] sm:$0xff]  ;;  %v126_v39 = vsel %vm118_vm0, %v448_v37, 0 }
   0xc   :  { %249 = vmatpush.bf16.xpose.msra.mxu1 %v243_v7  ;;  %469 = vmatpush.bf16.xpose.msra.mxu3 %v243_v7  ;;  %v228_v36 = vsel %vm118_vm0, %v441_v34, 0  ;;  %v225_v40 = vsel %vm118_vm0, %v440_v38, 0  ;;  %v458_v41 = vld [vmem:[%s662_s3] sm:$0xff]  ;;  %v459_v42 = vld [vmem:[%s662_s3 + $0x8] sm:$0xff] }
   0xd   :  { %v456_v43 = vld [vmem:[%s661_s2] sm:$0xff]  ;;  %v457_v44 = vld [vmem:[%s661_s2 + $0x8] sm:$0xff] }
   0xf   :  { %288 = vperm.xlu1 %479, %v270_v24  }
  0x10   :  { %278 = vperm.xlu0 %478, %v268_v23  }
  0x11   :  { %310 = vperm.xlu2 %480, %v300_v30  }
  0x13   :  { %151 = vmatpush.bf16.xpose.msra.mxu0 %v141_v10  ;;  %462 = vmatpush.bf16.xpose.msra.mxu2 %v141_v10 }
  0x14   :  { %250 = vmatpush.bf16.xpose.msra.mxu1 %v240_v11  ;;  %470 = vmatpush.bf16.xpose.msra.mxu3 %v240_v11 }
  0x17   :  { %320 = vperm.xlu1 %479, %v302_v32  }
  0x18   :  { %315 = vperm.xlu0 %478, %v301_v31  }
  0x1b   :  { %152 = vmatpush.bf16.xpose.msra.mxu0 %v138_v14  ;;  %463 = vmatpush.bf16.xpose.msra.mxu2 %v138_v14 }
  0x1c   :  { %251 = vmatpush.bf16.xpose.msra.mxu1 %v237_v15  ;;  %471 = vmatpush.bf16.xpose.msra.mxu3 %v237_v15 }
  0x23   :  { %153 = vmatpush.bf16.xpose.msra.mxu0 %v135_v21  ;;  %464 = vmatpush.bf16.xpose.msra.mxu2 %v135_v21  ;;  %v337_v21 = vstv %s665_s6 }
  0x24   :  { %252 = vmatpush.bf16.xpose.msra.mxu1 %v234_v22  ;;  %472 = vmatpush.bf16.xpose.msra.mxu3 %v234_v22 }
  0x2b   :  { %154 = vmatpush.bf16.xpose.msra.mxu0 %v132_v28  ;;  %465 = vmatpush.bf16.xpose.msra.mxu2 %v132_v28 }
  0x2c   :  { %253 = vmatpush.bf16.xpose.msra.mxu1 %v231_v29  ;;  %473 = vmatpush.bf16.xpose.msra.mxu3 %v231_v29 }
  0x33   :  { %155 = vmatpush.bf16.xpose.msra.mxu0 %v129_v35  ;;  %466 = vmatpush.bf16.xpose.msra.mxu2 %v129_v35 }
  0x34   :  { %254 = vmatpush.bf16.xpose.msra.mxu1 %v228_v36  ;;  %474 = vmatpush.bf16.xpose.msra.mxu3 %v228_v36 }
  0x3b   :  { %156 = vmatpush.bf16.xpose.msra.mxu0 %v126_v39  ;;  %467 = vmatpush.bf16.xpose.msra.mxu2 %v126_v39 }
  0x3c   :  { %255 = vmatpush.bf16.xpose.msra.mxu1 %v225_v40  ;;  %475 = vmatpush.bf16.xpose.msra.mxu3 %v225_v40 }
  0x42   :  { %396 = vmatmul.msk.bf16.vlgmr.msra.gmra.mxu0 %vm118_vm0, %v458_v41  ;;  %397 = vmatmul.msk.bf16.vlgmr.msra.gmra.mxu2 %vm118_vm0, %v459_v42 }
  0x43   :  { %438 = vmatmul.msk.bf16.vlgmr.msra.gmra.mxu1 %vm118_vm0, %v456_v43  ;;  %439 = vmatmul.msk.bf16.vlgmr.msra.gmra.mxu3 %vm118_vm0, %v457_v44 }
  0x63   :  { %v306_v50 = vpop.permute.xlu2 %305 }
  0x6b   :  { %v311_v1 = vpop.permute.xlu2 %310 }
  0x79   :  { %v284_v47 = vpop.permute.xlu1 %283 }
  0x7a   :  { %v274_v45 = vpop.permute.xlu0 %273 }
  0x81   :  { %v289_v59 = vpop.permute.xlu1 %288 }
  0x82   :  { %v279_v56 = vpop.permute.xlu0 %278 }
  0x89   :  { %v321_v12 = vpop.permute.xlu1 %320 }
  0x8a   :  { %v316_v9 = vpop.permute.xlu0 %315 }
  0xbf   :  { %v158_v46 = vpop.f32.mrf.mxu0 }
  0xc0   :  { %v257_v48 = vpop.f32.mrf.mxu1 }
  0xc1   :  { %v258_v49 = vadd.f32 %v257_v48, %v158_v46 }
  0xc3   :  { %v291_v53 = vadd.f32 %v274_v45, %v258_v49 }
  0xc5   :  { %v163_v51 = vpop.f32.mrf.mxu2  ;;  %v295_v60 = vmax.f32 %v291_v53, 0.0 }
  0xc6   :  { %v262_v52 = vpop.f32.mrf.mxu3 }
  0xc7   :  { %v263_v54 = vadd.f32 %v262_v52, %v163_v51  ;;  %v160_v55 = vpop.f32.mrf.mxu0  ;;  %v323_v3 = vmul.f32 %v306_v50, %v295_v60 }
  0xc8   :  { %v259_v57 = vpop.f32.mrf.mxu1 }
  0xc9   :  { %v260_v58 = vadd.f32 %v259_v57, %v160_v55  ;;  %v293_v61 = vadd.f32 %v284_v47, %v263_v54 }
  0xcb   :  { %v292_v62 = vadd.f32 %v279_v56, %v260_v58  ;;  %v297_v4 = vmax.f32 %v293_v61, 0.0 }
  0xcd   :  { %v296_v63 = vmax.f32 %v292_v62, 0.0  ;;  %v165_v0 = vpop.f32.mrf.mxu2  ;;  %v325_v10 = vmul.f32 %v316_v9, %v297_v4 }
  0xce   :  { %v264_v2 = vpop.f32.mrf.mxu3 }
  0xcf   :  { %v324_v5 = vmul.f32 %v311_v1, %v296_v63  ;;  %v265_v6 = vadd.f32 %v264_v2, %v165_v0 }
  0xd1   :  { %v327_v7 = vadd.f32 %v324_v5, %v323_v3  ;;  %v294_v8 = vadd.f32 %v289_v59, %v265_v6 }
  0xd3   :  { %v298_v11 = vmax.f32 %v294_v8, 0.0  ;;  %v328_v14 = vadd.f32 %v327_v7, %v325_v10 }
  0xd5   :  { %v326_v13 = vmul.f32 %v321_v12, %v298_v11 }
  0xd7   :  { %v329_v15 = vadd.f32 %v328_v14, %v326_v13 }
  0xd9   :  { %v330_v16 = vrot.slane %v329_v15, 4 }
  0xdb   :  { %v331_v17 = vadd.f32 %v330_v16, %v329_v15 }
  0xdd   :  { %v332_v18 = vrot.slane %v331_v17, 2 }
  0xdf   :  { %v333_v19 = vadd.f32 %v332_v18, %v331_v17 }
  0xe1   :  { %v334_v20 = vrot.slane %v333_v19, 1 }
  0xe3   :  { %v335_v22 = vadd.f32 %v334_v20, %v333_v19 }
  0xe5   :  { %v338_v23 = vadd.f32 %v337_v21, %v335_v22 }
  0xe7   :  { %339 = vst [vmem:[#allocation3] sm:$0x1] %v338_v23 }
  0xe8   :  { %350 = dma.vmem_to_hbm [thread:$0]  %s346_s8, 16, %s348_s11, [#allocation4]  }
  0xe9   :  { %505 = dma.done.wait [#allocation4], 16  }
  0xea   :  { %506 = vsyncadd [#allocation4], 4294967280 }
  0xeb   :  { %355 = vsyncpa [#allocation4], 1 }

</bundles_post_ra>
